<compile_context>
chip_gen: v6e
topology: v6e:2x2x1
jax: 0.10.0
libtpu: 0.0.40
codegen_flags: <defaults>
</compile_context>

<pallas_src>
import functools

import jax
import jax.numpy as jnp
from jax.experimental import pallas as pl
from jax.experimental.pallas import tpu as pltpu

KERNEL_SIZE = 7
STRIDE = 2
PAD = 3
EPS = 1e-5  # torch.nn.LayerNorm default eps


def _round_up(x, m):
    return (x + m - 1) // m * m


def _vmem_capacity_bytes():
    """Best-effort per-core VMEM capacity; conservative (v7x) fallback."""
    try:
        info = pltpu.get_tpu_info()
        for name in ("vmem_capacity_bytes", "vmem_size_bytes", "vmem_bytes"):
            v = getattr(info, name, None)
            if isinstance(v, int) and v > 0:
                return v
    except Exception:
        pass
    return 64 * 1024 * 1024


def _spec(shape, imap, mode=None):
    if mode is None:
        return pl.BlockSpec(shape, imap)
    return pl.BlockSpec(shape, imap, pipeline_mode=mode)


def _ln_store(x_raw, g, bt, cin, win_ref, dst_row, mask):
    """Two-pass LayerNorm of each packed half of x_raw (rows, 2*cin), affine,
    optional validity mask (None / scalar / (rows,1) bool), stored per half into
    win_ref rows [dst_row, dst_row+rows).  No (rows, 2*cin) concat intermediate.
    jnp.where masking is NaN-safe against unspecified out-of-bounds block data."""
    x = x_raw.astype(jnp.float32)
    rows = x.shape[0]
    inv = 1.0 / cin
    for h in range(2):
        xh = x[:, h * cin:(h + 1) * cin]
        mean = jnp.sum(xh, axis=-1, keepdims=True) * inv
        c = xh - mean
        var = jnp.sum(c * c, axis=-1, keepdims=True) * inv
        y = c * jax.lax.rsqrt(var + EPS) * g + bt
        if mask is not None:
            y = jnp.where(mask, y, 0.0)
        win_ref[pl.ds(dst_row, rows), pl.ds(h * cin, cin)] = y.astype(win_ref.dtype)


def _downsample_kernel(z_ref, zp_ref, zn_ref, g_ref, b_ref, w0_ref, w_ref,
                       bias_ref, o_ref, win_ref, *, T, Cin, Lz, ragged):
    t = pl.program_id(1)
    n = pl.program_id(2)

    # Stage the normalized (T+3)-row window once per (batch, row-tile); the Cout
    # axis (n, innermost, "arbitrary") revisits the same persistent scratch.
    @pl.when(n == 0)
    def _stage():
        g = g_ref[...]          # (1, Cin) f32
        bt = b_ref[...]         # (1, Cin) f32
        row0 = t * T
        main_mask = None
        if ragged:              # static Python flag: only the cdiv'd last tile needs it
            r = jax.lax.broadcasted_iota(jnp.int32, (T, 1), 0)
            main_mask = (row0 + r) < Lz
        # main tile: window rows [8, 8+T)  <->  z rows [row0, row0+T)
        _ln_store(z_ref[0], g, bt, Cin, win_ref, 8, main_mask)
        # prev halo: last 2 rows of the clamped 8-row block = z rows row0-2, row0-1;
        # at the sequence front they are Conv1d zero padding (applied post-norm).
        _ln_store(zp_ref[0, 6:8, :], g, bt, Cin, win_ref, 6, t > 0)
        # next halo: first row of the clamped 8-row block = z row row0+T;
        # zero past the end of the sequence.
        _ln_store(zn_ref[0, 0:1, :], g, bt, Cin, win_ref, 8 + T,
                  (t + 1) * T < Lz)

    # Conv as 4 unit-stride taps.  Tap 0 only touches the odd half of z[p-2]
    # (its zero half-weight was removed from the folded weights entirely).
    acc = jnp.dot(win_ref[pl.ds(6, T), pl.ds(Cin, Cin)], w0_ref[...],
                  preferred_element_type=jnp.float32)
    for j in range(3):
        acc = acc + jnp.dot(win_ref[pl.ds(7 + j, T), :], w_ref[j],
                            preferred_element_type=jnp.float32)
    o_ref[0] = (acc + bias_ref[...]).astype(o_ref.dtype)


def downsample_nlc(x_nlc, gamma, beta, w, b, *, compute_dtype=jnp.bfloat16,
                   tile_cap=None, cout_tile=None):
    """Channels-last entry point: x_nlc (B, L, Cin) -> (B, L//2, Cout).

    No HBM transposes: the space-to-depth packing (B,L,Cin)->(B,L/2,2Cin) is a free
    row-major reshape and the output is already channels-last.  bf16 inputs/outputs
    are supported end-to-end (LN statistics are computed in f32 in-kernel).
    Requires L % 16 == 0; L//2 need not be divisible by the row tile.
    """
    B, L, Cin = x_nlc.shape
    Cout, cin_w, k = w.shape
    assert cin_w == Cin and k == KERNEL_SIZE
    assert L % 2 == 0 and (L // 2) % 8 == 0, "L must be a multiple of 16"
    Lz = L // STRIDE
    C2 = 2 * Cin

    # Lane-dense output: pad large ragged Cout up to a multiple of 128 (unmasked
    # stores, MXU-lane fill); tiny Cout stays unpadded to avoid inflating HBM
    # writeback.  TODO(synk): padding Cin/C2 would need masked LN stats; left out.
    Cout_p = Cout
    if Cout > 128 and Cout % 128 != 0:
        Cout_p = _round_up(Cout, 128)
        w = jnp.pad(w, ((0, Cout_p - Cout), (0, 0), (0, 0)))
        b = jnp.pad(b, (0, Cout_p - Cout))

    vmem_cap = _vmem_capacity_bytes()
    comp_bytes = jnp.dtype(compute_dtype).itemsize
    io_bytes = jnp.dtype(x_nlc.dtype).itemsize

    # Cout tile: largest multiple of 128 dividing Cout_p (capped at 512), else full.
    if cout_tile is not None:
        TN = int(cout_tile)
        assert Cout_p % TN == 0 and (TN == Cout_p or TN % 128 == 0)
    elif Cout_p % 128 == 0:
        TN = min(Cout_p, 512)
        while Cout_p % TN != 0:
            TN -= 128
    else:
        TN = Cout_p
    NN = Cout_p // TN

    # Row tile: biggest multiple of 8 whose footprint fits the VMEM budget.
    # v5e/v6e (128 MiB VMEM) -> cap 1024 rows; v7x (64 MiB) -> cap 512.
    if tile_cap is None:
        tile_cap = 1024 if vmem_cap >= (100 << 20) else 512
    w_bufs = 1 if NN == 1 else 2   # constants single-buffered when Cout untiled

    def footprint(T):
        return ((3 * C2 + Cin) * TN * comp_bytes * w_bufs   # folded conv weights
                + 2 * T * C2 * io_bytes                      # main input (2 bufs)
                + 2 * 2 * 8 * C2 * io_bytes                  # two 8-row halo blocks
                + 2 * T * TN * io_bytes                      # output (2 bufs)
                + (T + 16) * C2 * comp_bytes                 # staged window scratch
                + 4 * (2 * Cin + TN) * 4)                    # affine + bias

    T = max(8, (min(tile_cap, _round_up(Lz, 8)) // 8) * 8)
    budget = int(vmem_cap * 0.6)
    while T > 8 and footprint(T) > budget:
        T -= 8
    NT = pl.cdiv(Lz, T)
    ragged = (Lz % T) != 0
    nb = T // 8                     # halo blocks are 8 rows

    vmem_limit = min(int(vmem_cap * 0.85),
                     max(32 << 20, footprint(T) + (8 << 20)))

    z = x_nlc.reshape(B, Lz, C2)    # space-to-depth: free row-major reshape

    # Fold the 7 conv taps into 1 (Cin, Cout) + 3 (2*Cin, Cout) slabs
    # (tap z-row offsets -2..+1; the even half of the -2 tap is identically zero
    # and is not materialized).
    wt = jnp.transpose(w, (2, 1, 0)).astype(compute_dtype)      # (7, Cin, Cout_p)
    w0 = wt[0]                                                   # odd half of z[p-2]
    wz = jnp.stack([
        jnp.concatenate([wt[1], wt[2]], axis=0),                 # z[p-1]
        jnp.concatenate([wt[3], wt[4]], axis=0),                 # z[p]
        jnp.concatenate([wt[5], wt[6]], axis=0),                 # z[p+1]
    ], axis=0)                                                   # (3, 2*Cin, Cout_p)

    gamma1 = gamma.reshape(1, Cin).astype(jnp.float32)
    beta1 = beta.reshape(1, Cin).astype(jnp.float32)
    bias1 = b.reshape(1, Cout_p).astype(jnp.float32)

    const_mode = pl.Buffered(1)                    # never re-fetched -> one buffer
    wmode = pl.Buffered(1) if NN == 1 else None    # varies with n when Cout-tiled

    kern = functools.partial(_downsample_kernel, T=T, Cin=Cin, Lz=Lz,
                             ragged=ragged)

    out = pl.pallas_call(
        kern,
        out_shape=jax.ShapeDtypeStruct((B, Lz, Cout_p), x_nlc.dtype),
        grid_spec=pltpu.PrefetchScalarGridSpec(
            num_scalar_prefetch=0,
            grid=(B, NT, NN),
            in_specs=[
                # main tile
                _spec((1, T, C2), lambda bb, t, n: (bb, t, 0)),
                # previous-halo (8 rows ending at t*T), clamped at the front
                _spec((1, 8, C2),
                      lambda bb, t, n: (bb, jnp.maximum(t * nb - 1, 0), 0)),
                # next-halo (8 rows starting at (t+1)*T), clamped at the back
                _spec((1, 8, C2),
                      lambda bb, t, n: (bb, jnp.minimum((t + 1) * nb,
                                                        Lz // 8 - 1), 0)),
                _spec((1, Cin), lambda bb, t, n: (0, 0), const_mode),      # gamma
                _spec((1, Cin), lambda bb, t, n: (0, 0), const_mode),      # beta
                _spec((Cin, TN), lambda bb, t, n: (0, n), wmode),          # tap-0 w
                _spec((3, C2, TN), lambda bb, t, n: (0, 0, n), wmode),     # taps 1-3
                _spec((1, TN), lambda bb, t, n: (0, n), wmode),            # bias
            ],
            out_specs=pl.BlockSpec((1, T, TN), lambda bb, t, n: (bb, t, n)),
            scratch_shapes=[pltpu.VMEM((T + 16, C2), compute_dtype)],
        ),
        compiler_params=pltpu.CompilerParams(
            dimension_semantics=("parallel", "parallel", "arbitrary"),
            vmem_limit_bytes=vmem_limit),
    )(z, z, z, gamma1, beta1, w0, wz, bias1)

    if Cout_p != Cout:
        out = out[:, :, :Cout]
    return out


def downsample(x, gamma, beta, w, b, *, compute_dtype=jnp.bfloat16,
               tile_cap=None, cout_tile=None):
    """PyTorch-layout API: x (B, Cin, L) -> (B, Cout, L//2).

    The two transposes exist only for NCL (Conv1d) API parity; a channels-last
    model should call downsample_nlc directly and pay zero extra HBM passes.
    """
    out_nlc = downsample_nlc(jnp.transpose(x, (0, 2, 1)), gamma, beta, w, b,
                             compute_dtype=compute_dtype, tile_cap=tile_cap,
                             cout_tile=cout_tile)
    return jnp.transpose(out_nlc, (0, 2, 1))


def reference(x, gamma, beta, w, b):
    """Pure-JAX reference matching the PyTorch DownSample.forward."""
    xt = jnp.transpose(x, (0, 2, 1)).astype(jnp.float32)        # (B, L, Cin)
    mean = xt.mean(-1, keepdims=True)
    var = ((xt - mean) ** 2).mean(-1, keepdims=True)
    xn = (xt - mean) / jnp.sqrt(var + EPS) * gamma + beta
    xn = jnp.transpose(xn, (0, 2, 1))                           # (B, Cin, L)
    y = jax.lax.conv_general_dilated(
        xn, w.astype(jnp.float32),
        window_strides=(STRIDE,), padding=[(PAD, PAD)],
        dimension_numbers=("NCH", "OIH", "NCH"),
        precision=jax.lax.Precision.HIGHEST)
    return y + b[None, :, None]


def _make_params(key, Cin, Cout):
    kg, kb, kw, kc = jax.random.split(key, 4)
    gamma = 1.0 + 0.1 * jax.random.normal(kg, (Cin,), jnp.float32)
    beta = 0.1 * jax.random.normal(kb, (Cin,), jnp.float32)
    bound = 1.0 / (Cin * KERNEL_SIZE) ** 0.5
    w = jax.random.uniform(kw, (Cout, Cin, KERNEL_SIZE), jnp.float32,
                           -bound, bound)
    b = jax.random.uniform(kc, (Cout,), jnp.float32, -bound, bound)
    return gamma, beta, w, b


def _run_case(key, B, Cin, Cout, L, tile_cap=None, cout_tile=None,
              bf16_io=False):
    kx, kp = jax.random.split(key)
    x = jax.random.normal(kx, (B, Cin, L), jnp.float32)
    gamma, beta, w, b = _make_params(kp, Cin, Cout)

    ref = jax.block_until_ready(reference(x, gamma, beta, w, b))

    # f32 matmul path: tight check against the PyTorch-equivalent reference.
    out = jax.block_until_ready(
        downsample(x, gamma, beta, w, b, compute_dtype=jnp.float32,
                   tile_cap=tile_cap, cout_tile=cout_tile))
    assert out.shape == (B, Cout, L // STRIDE), out.shape
    assert jnp.allclose(out, ref, rtol=1e-4, atol=1e-4), (
        float(jnp.max(jnp.abs(out - ref))))

    # bf16 matmul fast path (f32 accumulation): looser tolerance.
    out16 = jax.block_until_ready(
        downsample(x, gamma, beta, w, b, compute_dtype=jnp.bfloat16,
                   tile_cap=tile_cap, cout_tile=cout_tile))
    assert jnp.allclose(out16, ref, rtol=5e-2, atol=5e-2), (
        float(jnp.max(jnp.abs(out16 - ref))))

    if bf16_io:
        # bf16 activations end-to-end (feedback item): compare against the
        # reference evaluated on the bf16-quantized input.
        xb = x.astype(jnp.bfloat16)
        refb = jax.block_until_ready(
            reference(xb.astype(jnp.float32), gamma, beta, w, b))
        outb = jax.block_until_ready(
            downsample(xb, gamma, beta, w, b, compute_dtype=jnp.bfloat16,
                       tile_cap=tile_cap, cout_tile=cout_tile))
        assert outb.dtype == jnp.bfloat16
        assert jnp.allclose(outb.astype(jnp.float32), refb,
                            rtol=5e-2, atol=5e-2), (
            float(jnp.max(jnp.abs(outb.astype(jnp.float32) - refb))))


if __name__ == "__main__":
    root = jax.random.PRNGKey(0)
    k1, k2, k3, k4 = jax.random.split(root, 4)
    # single-tile case at the module's small example shape (auto tiling)
    _run_case(k1, B=2, Cin=4, Cout=8, L=16)
    # multi-tile case: exercises L tiling, halo blocks, edge masking, bf16 I/O
    _run_case(k2, B=2, Cin=8, Cout=16, L=64, tile_cap=8, bf16_io=True)
    # ragged case: L//2 = 40 not divisible by T=16 -> cdiv grid + row mask
    _run_case(k3, B=1, Cin=8, Cout=16, L=80, tile_cap=16)
    # Cout-tiled case: 2 output-channel tiles, staging gated on n == 0
    _run_case(k4, B=1, Cin=8, Cout=256, L=64, tile_cap=16, cout_tile=128)
    print("KERNEL_OK")
</pallas_src>

<mosaic_0001>
module attributes {stable_mosaic.version = 11 : i64} {
  func.func @_downsample_kernel(%arg0: i32, %arg1: i32, %arg2: i32, %arg3: memref<1x8x8xf32, #tpu.memory_space<vmem>>, %arg4: memref<1x8x8xf32, #tpu.memory_space<vmem>>, %arg5: memref<1x8x8xf32, #tpu.memory_space<vmem>>, %arg6: memref<1x4xf32, #tpu.memory_space<vmem>>, %arg7: memref<1x4xf32, #tpu.memory_space<vmem>>, %arg8: memref<4x8xf32, #tpu.memory_space<vmem>>, %arg9: memref<3x8x8xf32, #tpu.memory_space<vmem>>, %arg10: memref<1x8xf32, #tpu.memory_space<vmem>>, %arg11: memref<1x8x8xf32, #tpu.memory_space<vmem>>, %arg12: memref<24x8xf32, #tpu.memory_space<vmem>>) attributes {dimension_semantics = [#tpu.dimension_semantics<parallel>, #tpu.dimension_semantics<parallel>, #tpu.dimension_semantics<arbitrary>], iteration_bounds = array<i64: 2, 1, 1>, scalar_prefetch = 0 : i64, scratch_operands = 1 : i64, tpu.core_type = #tpu.core_type<tc>, window_params = [{transform_indices = @transform_0, window_bounds = array<i64: 1, 8, 8>}, {transform_indices = @transform_1, window_bounds = array<i64: 1, 8, 8>}, {transform_indices = @transform_2, window_bounds = array<i64: 1, 8, 8>}, {pipeline_mode = #tpu.pipeline_mode<synchronous>, transform_indices = @transform_3, window_bounds = array<i64: 1, 4>}, {pipeline_mode = #tpu.pipeline_mode<synchronous>, transform_indices = @transform_4, window_bounds = array<i64: 1, 4>}, {pipeline_mode = #tpu.pipeline_mode<synchronous>, transform_indices = @transform_5, window_bounds = array<i64: 4, 8>}, {pipeline_mode = #tpu.pipeline_mode<synchronous>, transform_indices = @transform_6, window_bounds = array<i64: 3, 8, 8>}, {pipeline_mode = #tpu.pipeline_mode<synchronous>, transform_indices = @transform_7, window_bounds = array<i64: 1, 8>}, {transform_indices = @transform_8, window_bounds = array<i64: 1, 8, 8>}]} {
    %c0_i32 = arith.constant 0 : i32
    %0 = arith.cmpi eq, %arg2, %c0_i32 : i32
    %1 = arith.extui %0 : i1 to i32
    %c0_i32_0 = arith.constant 0 : i32
    %2 = arith.cmpi ne, %1, %c0_i32_0 : i32
    scf.if %2 {
      %c0_20 = arith.constant 0 : index
      %c0_21 = arith.constant 0 : index
      %27 = vector.load %arg6[%c0_20, %c0_21] : memref<1x4xf32, #tpu.memory_space<vmem>>, vector<1x4xf32>
      %c0_22 = arith.constant 0 : index
      %c0_23 = arith.constant 0 : index
      %28 = vector.load %arg7[%c0_22, %c0_23] : memref<1x4xf32, #tpu.memory_space<vmem>>, vector<1x4xf32>
      %c0_24 = arith.constant 0 : index
      %c0_25 = arith.constant 0 : index
      %c0_26 = arith.constant 0 : index
      %29 = vector.load %arg3[%c0_24, %c0_25, %c0_26] : memref<1x8x8xf32, #tpu.memory_space<vmem>>, vector<1x8x8xf32>
      %30 = vector.shape_cast %29 : vector<1x8x8xf32> to vector<8x8xf32>
      %31 = vector.extract_strided_slice %30 {offsets = [0, 0], sizes = [8, 4], strides = [1, 1]} : vector<8x8xf32> to vector<8x4xf32>
      %cst_27 = arith.constant dense<0.000000e+00> : vector<8xf32>
      %32 = vector.multi_reduction <add>, %31, %cst_27 [1] : vector<8x4xf32> to vector<8xf32>
      %33 = vector.shape_cast %32 : vector<8xf32> to vector<8x1xf32>
      %cst_28 = arith.constant 2.500000e-01 : f32
      %34 = vector.broadcast %cst_28 : f32 to vector<8x1xf32>
      %35 = arith.mulf %33, %34 : vector<8x1xf32>
      %36 = vector.broadcast %35 : vector<8x1xf32> to vector<8x4xf32>
      %37 = arith.subf %31, %36 : vector<8x4xf32>
      %38 = arith.mulf %37, %37 : vector<8x4xf32>
      %cst_29 = arith.constant dense<0.000000e+00> : vector<8xf32>
      %39 = vector.multi_reduction <add>, %38, %cst_29 [1] : vector<8x4xf32> to vector<8xf32>
      %40 = vector.shape_cast %39 : vector<8xf32> to vector<8x1xf32>
      %cst_30 = arith.constant 2.500000e-01 : f32
      %41 = vector.broadcast %cst_30 : f32 to vector<8x1xf32>
      %42 = arith.mulf %40, %41 : vector<8x1xf32>
      %cst_31 = arith.constant 9.99999974E-6 : f32
      %43 = vector.broadcast %cst_31 : f32 to vector<8x1xf32>
      %44 = arith.addf %42, %43 : vector<8x1xf32>
      %45 = math.rsqrt %44 : vector<8x1xf32>
      %46 = vector.broadcast %45 : vector<8x1xf32> to vector<8x4xf32>
      %47 = arith.mulf %37, %46 : vector<8x4xf32>
      %48 = vector.broadcast %27 : vector<1x4xf32> to vector<8x4xf32>
      %49 = arith.mulf %47, %48 : vector<8x4xf32>
      %50 = vector.broadcast %28 : vector<1x4xf32> to vector<8x4xf32>
      %51 = arith.addf %49, %50 : vector<8x4xf32>
      %c8_32 = arith.constant 8 : index
      %c0_33 = arith.constant 0 : index
      %52 = vector.load %arg12[%c8_32, %c0_33] : memref<24x8xf32, #tpu.memory_space<vmem>>, vector<8x4xf32>
      tpu.vector_store %arg12[%c8_32, %c0_33], %51 {strides = array<i32>} : memref<24x8xf32, #tpu.memory_space<vmem>>, vector<8x4xf32>,
      %53 = vector.extract_strided_slice %30 {offsets = [0, 4], sizes = [8, 4], strides = [1, 1]} : vector<8x8xf32> to vector<8x4xf32>
      %cst_34 = arith.constant dense<0.000000e+00> : vector<8xf32>
      %54 = vector.multi_reduction <add>, %53, %cst_34 [1] : vector<8x4xf32> to vector<8xf32>
      %55 = vector.shape_cast %54 : vector<8xf32> to vector<8x1xf32>
      %cst_35 = arith.constant 2.500000e-01 : f32
      %56 = vector.broadcast %cst_35 : f32 to vector<8x1xf32>
      %57 = arith.mulf %55, %56 : vector<8x1xf32>
      %58 = vector.broadcast %57 : vector<8x1xf32> to vector<8x4xf32>
      %59 = arith.subf %53, %58 : vector<8x4xf32>
      %60 = arith.mulf %59, %59 : vector<8x4xf32>
      %cst_36 = arith.constant dense<0.000000e+00> : vector<8xf32>
      %61 = vector.multi_reduction <add>, %60, %cst_36 [1] : vector<8x4xf32> to vector<8xf32>
      %62 = vector.shape_cast %61 : vector<8xf32> to vector<8x1xf32>
      %cst_37 = arith.constant 2.500000e-01 : f32
      %63 = vector.broadcast %cst_37 : f32 to vector<8x1xf32>
      %64 = arith.mulf %62, %63 : vector<8x1xf32>
      %cst_38 = arith.constant 9.99999974E-6 : f32
      %65 = vector.broadcast %cst_38 : f32 to vector<8x1xf32>
      %66 = arith.addf %64, %65 : vector<8x1xf32>
      %67 = math.rsqrt %66 : vector<8x1xf32>
      %68 = vector.broadcast %67 : vector<8x1xf32> to vector<8x4xf32>
      %69 = arith.mulf %59, %68 : vector<8x4xf32>
      %70 = vector.broadcast %27 : vector<1x4xf32> to vector<8x4xf32>
      %71 = arith.mulf %69, %70 : vector<8x4xf32>
      %72 = vector.broadcast %28 : vector<1x4xf32> to vector<8x4xf32>
      %73 = arith.addf %71, %72 : vector<8x4xf32>
      %c8_39 = arith.constant 8 : index
      %c4_40 = arith.constant 4 : index
      %74 = vector.load %arg12[%c8_39, %c4_40] : memref<24x8xf32, #tpu.memory_space<vmem>>, vector<8x4xf32>
      tpu.vector_store %arg12[%c8_39, %c4_40], %73 {strides = array<i32>} : memref<24x8xf32, #tpu.memory_space<vmem>>, vector<8x4xf32>,
      %c0_41 = arith.constant 0 : index
      %c6_42 = arith.constant 6 : index
      %c0_43 = arith.constant 0 : index
      %75 = vector.load %arg4[%c0_41, %c6_42, %c0_43] : memref<1x8x8xf32, #tpu.memory_space<vmem>>, vector<1x2x8xf32>
      %76 = vector.shape_cast %75 : vector<1x2x8xf32> to vector<2x8xf32>
      %c0_i32_44 = arith.constant 0 : i32
      %77 = arith.cmpi sgt, %arg1, %c0_i32_44 : i32
      %78 = vector.extract_strided_slice %76 {offsets = [0, 0], sizes = [2, 4], strides = [1, 1]} : vector<2x8xf32> to vector<2x4xf32>
      %cst_45 = arith.constant dense<0.000000e+00> : vector<2xf32>
      %79 = vector.multi_reduction <add>, %78, %cst_45 [1] : vector<2x4xf32> to vector<2xf32>
      %80 = vector.shape_cast %79 : vector<2xf32> to vector<2x1xf32>
      %cst_46 = arith.constant 2.500000e-01 : f32
      %81 = vector.broadcast %cst_46 : f32 to vector<2x1xf32>
      %82 = arith.mulf %80, %81 : vector<2x1xf32>
      %83 = vector.broadcast %82 : vector<2x1xf32> to vector<2x4xf32>
      %84 = arith.subf %78, %83 : vector<2x4xf32>
      %85 = arith.mulf %84, %84 : vector<2x4xf32>
      %cst_47 = arith.constant dense<0.000000e+00> : vector<2xf32>
      %86 = vector.multi_reduction <add>, %85, %cst_47 [1] : vector<2x4xf32> to vector<2xf32>
      %87 = vector.shape_cast %86 : vector<2xf32> to vector<2x1xf32>
      %cst_48 = arith.constant 2.500000e-01 : f32
      %88 = vector.broadcast %cst_48 : f32 to vector<2x1xf32>
      %89 = arith.mulf %87, %88 : vector<2x1xf32>
      %cst_49 = arith.constant 9.99999974E-6 : f32
      %90 = vector.broadcast %cst_49 : f32 to vector<2x1xf32>
      %91 = arith.addf %89, %90 : vector<2x1xf32>
      %92 = math.rsqrt %91 : vector<2x1xf32>
      %93 = vector.broadcast %92 : vector<2x1xf32> to vector<2x4xf32>
      %94 = arith.mulf %84, %93 : vector<2x4xf32>
      %95 = vector.broadcast %27 : vector<1x4xf32> to vector<2x4xf32>
      %96 = arith.mulf %94, %95 : vector<2x4xf32>
      %97 = vector.broadcast %28 : vector<1x4xf32> to vector<2x4xf32>
      %98 = arith.addf %96, %97 : vector<2x4xf32>
      %cst_50 = arith.constant 0.000000e+00 : f32
      %99 = vector.broadcast %cst_50 : f32 to vector<2x4xf32>
      %100 = arith.select %77, %98, %99 : vector<2x4xf32>
      %c6_51 = arith.constant 6 : index
      %c0_52 = arith.constant 0 : index
      %101 = vector.load %arg12[%c6_51, %c0_52] : memref<24x8xf32, #tpu.memory_space<vmem>>, vector<2x4xf32>
      tpu.vector_store %arg12[%c6_51, %c0_52], %100 {strides = array<i32>} : memref<24x8xf32, #tpu.memory_space<vmem>>, vector<2x4xf32>,
      %102 = vector.extract_strided_slice %76 {offsets = [0, 4], sizes = [2, 4], strides = [1, 1]} : vector<2x8xf32> to vector<2x4xf32>
      %cst_53 = arith.constant dense<0.000000e+00> : vector<2xf32>
      %103 = vector.multi_reduction <add>, %102, %cst_53 [1] : vector<2x4xf32> to vector<2xf32>
      %104 = vector.shape_cast %103 : vector<2xf32> to vector<2x1xf32>
      %cst_54 = arith.constant 2.500000e-01 : f32
      %105 = vector.broadcast %cst_54 : f32 to vector<2x1xf32>
      %106 = arith.mulf %104, %105 : vector<2x1xf32>
      %107 = vector.broadcast %106 : vector<2x1xf32> to vector<2x4xf32>
      %108 = arith.subf %102, %107 : vector<2x4xf32>
      %109 = arith.mulf %108, %108 : vector<2x4xf32>
      %cst_55 = arith.constant dense<0.000000e+00> : vector<2xf32>
      %110 = vector.multi_reduction <add>, %109, %cst_55 [1] : vector<2x4xf32> to vector<2xf32>
      %111 = vector.shape_cast %110 : vector<2xf32> to vector<2x1xf32>
      %cst_56 = arith.constant 2.500000e-01 : f32
      %112 = vector.broadcast %cst_56 : f32 to vector<2x1xf32>
      %113 = arith.mulf %111, %112 : vector<2x1xf32>
      %cst_57 = arith.constant 9.99999974E-6 : f32
      %114 = vector.broadcast %cst_57 : f32 to vector<2x1xf32>
      %115 = arith.addf %113, %114 : vector<2x1xf32>
      %116 = math.rsqrt %115 : vector<2x1xf32>
      %117 = vector.broadcast %116 : vector<2x1xf32> to vector<2x4xf32>
      %118 = arith.mulf %108, %117 : vector<2x4xf32>
      %119 = vector.broadcast %27 : vector<1x4xf32> to vector<2x4xf32>
      %120 = arith.mulf %118, %119 : vector<2x4xf32>
      %121 = vector.broadcast %28 : vector<1x4xf32> to vector<2x4xf32>
      %122 = arith.addf %120, %121 : vector<2x4xf32>
      %cst_58 = arith.constant 0.000000e+00 : f32
      %123 = vector.broadcast %cst_58 : f32 to vector<2x4xf32>
      %124 = arith.select %77, %122, %123 : vector<2x4xf32>
      %c6_59 = arith.constant 6 : index
      %c4_60 = arith.constant 4 : index
      %125 = vector.load %arg12[%c6_59, %c4_60] : memref<24x8xf32, #tpu.memory_space<vmem>>, vector<2x4xf32>
      tpu.vector_store %arg12[%c6_59, %c4_60], %124 {strides = array<i32>} : memref<24x8xf32, #tpu.memory_space<vmem>>, vector<2x4xf32>,
      %c0_61 = arith.constant 0 : index
      %c0_62 = arith.constant 0 : index
      %c0_63 = arith.constant 0 : index
      %126 = vector.load %arg5[%c0_61, %c0_62, %c0_63] : memref<1x8x8xf32, #tpu.memory_space<vmem>>, vector<1x1x8xf32>
      %127 = vector.shape_cast %126 : vector<1x1x8xf32> to vector<1x8xf32>
      %c1_i32 = arith.constant 1 : i32
      %128 = arith.addi %arg1, %c1_i32 : i32
      %c8_i32 = arith.constant 8 : i32
      %129 = arith.muli %128, %c8_i32 : i32
      %c8_i32_64 = arith.constant 8 : i32
      %130 = arith.cmpi slt, %129, %c8_i32_64 : i32
      %131 = vector.extract_strided_slice %127 {offsets = [0, 0], sizes = [1, 4], strides = [1, 1]} : vector<1x8xf32> to vector<1x4xf32>
      %cst_65 = arith.constant dense<0.000000e+00> : vector<1xf32>
      %132 = vector.multi_reduction <add>, %131, %cst_65 [1] : vector<1x4xf32> to vector<1xf32>
      %133 = vector.shape_cast %132 : vector<1xf32> to vector<1x1xf32>
      %cst_66 = arith.constant 2.500000e-01 : f32
      %134 = vector.broadcast %cst_66 : f32 to vector<1x1xf32>
      %135 = arith.mulf %133, %134 : vector<1x1xf32>
      %136 = vector.broadcast %135 : vector<1x1xf32> to vector<1x4xf32>
      %137 = arith.subf %131, %136 : vector<1x4xf32>
      %138 = arith.mulf %137, %137 : vector<1x4xf32>
      %cst_67 = arith.constant dense<0.000000e+00> : vector<1xf32>
      %139 = vector.multi_reduction <add>, %138, %cst_67 [1] : vector<1x4xf32> to vector<1xf32>
      %140 = vector.shape_cast %139 : vector<1xf32> to vector<1x1xf32>
      %cst_68 = arith.constant 2.500000e-01 : f32
      %141 = vector.broadcast %cst_68 : f32 to vector<1x1xf32>
      %142 = arith.mulf %140, %141 : vector<1x1xf32>
      %cst_69 = arith.constant 9.99999974E-6 : f32
      %143 = vector.broadcast %cst_69 : f32 to vector<1x1xf32>
      %144 = arith.addf %142, %143 : vector<1x1xf32>
      %145 = math.rsqrt %144 : vector<1x1xf32>
      %146 = vector.broadcast %145 : vector<1x1xf32> to vector<1x4xf32>
      %147 = arith.mulf %137, %146 : vector<1x4xf32>
      %148 = arith.mulf %147, %27 : vector<1x4xf32>
      %149 = arith.addf %148, %28 : vector<1x4xf32>
      %cst_70 = arith.constant 0.000000e+00 : f32
      %150 = vector.broadcast %cst_70 : f32 to vector<1x4xf32>
      %151 = arith.select %130, %149, %150 : vector<1x4xf32>
      %c16 = arith.constant 16 : index
      %c0_71 = arith.constant 0 : index
      %152 = vector.load %arg12[%c16, %c0_71] : memref<24x8xf32, #tpu.memory_space<vmem>>, vector<1x4xf32>
      tpu.vector_store %arg12[%c16, %c0_71], %151 {strides = array<i32>} : memref<24x8xf32, #tpu.memory_space<vmem>>, vector<1x4xf32>,
      %153 = vector.extract_strided_slice %127 {offsets = [0, 4], sizes = [1, 4], strides = [1, 1]} : vector<1x8xf32> to vector<1x4xf32>
      %cst_72 = arith.constant dense<0.000000e+00> : vector<1xf32>
      %154 = vector.multi_reduction <add>, %153, %cst_72 [1] : vector<1x4xf32> to vector<1xf32>
      %155 = vector.shape_cast %154 : vector<1xf32> to vector<1x1xf32>
      %cst_73 = arith.constant 2.500000e-01 : f32
      %156 = vector.broadcast %cst_73 : f32 to vector<1x1xf32>
      %157 = arith.mulf %155, %156 : vector<1x1xf32>
      %158 = vector.broadcast %157 : vector<1x1xf32> to vector<1x4xf32>
      %159 = arith.subf %153, %158 : vector<1x4xf32>
      %160 = arith.mulf %159, %159 : vector<1x4xf32>
      %cst_74 = arith.constant dense<0.000000e+00> : vector<1xf32>
      %161 = vector.multi_reduction <add>, %160, %cst_74 [1] : vector<1x4xf32> to vector<1xf32>
      %162 = vector.shape_cast %161 : vector<1xf32> to vector<1x1xf32>
      %cst_75 = arith.constant 2.500000e-01 : f32
      %163 = vector.broadcast %cst_75 : f32 to vector<1x1xf32>
      %164 = arith.mulf %162, %163 : vector<1x1xf32>
      %cst_76 = arith.constant 9.99999974E-6 : f32
      %165 = vector.broadcast %cst_76 : f32 to vector<1x1xf32>
      %166 = arith.addf %164, %165 : vector<1x1xf32>
      %167 = math.rsqrt %166 : vector<1x1xf32>
      %168 = vector.broadcast %167 : vector<1x1xf32> to vector<1x4xf32>
      %169 = arith.mulf %159, %168 : vector<1x4xf32>
      %170 = arith.mulf %169, %27 : vector<1x4xf32>
      %171 = arith.addf %170, %28 : vector<1x4xf32>
      %cst_77 = arith.constant 0.000000e+00 : f32
      %172 = vector.broadcast %cst_77 : f32 to vector<1x4xf32>
      %173 = arith.select %130, %171, %172 : vector<1x4xf32>
      %c16_78 = arith.constant 16 : index
      %c4_79 = arith.constant 4 : index
      %174 = vector.load %arg12[%c16_78, %c4_79] : memref<24x8xf32, #tpu.memory_space<vmem>>, vector<1x4xf32>
      tpu.vector_store %arg12[%c16_78, %c4_79], %173 {strides = array<i32>} : memref<24x8xf32, #tpu.memory_space<vmem>>, vector<1x4xf32>,
    } else {
    }
    %c6 = arith.constant 6 : index
    %c4 = arith.constant 4 : index
    %3 = vector.load %arg12[%c6, %c4] : memref<24x8xf32, #tpu.memory_space<vmem>>, vector<8x4xf32>
    %c0 = arith.constant 0 : index
    %c0_1 = arith.constant 0 : index
    %4 = vector.load %arg8[%c0, %c0_1] : memref<4x8xf32, #tpu.memory_space<vmem>>, vector<4x8xf32>
    %cst = arith.constant dense<0.000000e+00> : vector<8x8xf32>
    %5 = tpu.matmul %3, %4, %cst {dimension_numbers = #tpu.dot_dimension_numbers<[1], [0], [0], [1], [0, 0, 1, 1], [], []>} : vector<8x4xf32>, vector<4x8xf32>, vector<8x8xf32> -> vector<8x8xf32>
    %c7 = arith.constant 7 : index
    %c0_2 = arith.constant 0 : index
    %6 = vector.load %arg12[%c7, %c0_2] : memref<24x8xf32, #tpu.memory_space<vmem>>, vector<8x8xf32>
    %c0_3 = arith.constant 0 : index
    %c0_4 = arith.constant 0 : index
    %c0_5 = arith.constant 0 : index
    %7 = vector.load %arg9[%c0_3, %c0_4, %c0_5] : memref<3x8x8xf32, #tpu.memory_space<vmem>>, vector<1x8x8xf32>
    %8 = vector.shape_cast %7 : vector<1x8x8xf32> to vector<8x8xf32>
    %cst_6 = arith.constant dense<0.000000e+00> : vector<8x8xf32>
    %9 = tpu.matmul %6, %8, %cst_6 {dimension_numbers = #tpu.dot_dimension_numbers<[1], [0], [0], [1], [0, 0, 1, 1], [], []>} : vector<8x8xf32>, vector<8x8xf32>, vector<8x8xf32> -> vector<8x8xf32>
    %10 = arith.addf %5, %9 : vector<8x8xf32>
    %c8 = arith.constant 8 : index
    %c0_7 = arith.constant 0 : index
    %11 = vector.load %arg12[%c8, %c0_7] : memref<24x8xf32, #tpu.memory_space<vmem>>, vector<8x8xf32>
    %c1 = arith.constant 1 : index
    %c0_8 = arith.constant 0 : index
    %c0_9 = arith.constant 0 : index
    %12 = vector.load %arg9[%c1, %c0_8, %c0_9] : memref<3x8x8xf32, #tpu.memory_space<vmem>>, vector<1x8x8xf32>
    %13 = vector.shape_cast %12 : vector<1x8x8xf32> to vector<8x8xf32>
    %cst_10 = arith.constant dense<0.000000e+00> : vector<8x8xf32>
    %14 = tpu.matmul %11, %13, %cst_10 {dimension_numbers = #tpu.dot_dimension_numbers<[1], [0], [0], [1], [0, 0, 1, 1], [], []>} : vector<8x8xf32>, vector<8x8xf32>, vector<8x8xf32> -> vector<8x8xf32>
    %15 = arith.addf %10, %14 : vector<8x8xf32>
    %c9 = arith.constant 9 : index
    %c0_11 = arith.constant 0 : index
    %16 = vector.load %arg12[%c9, %c0_11] : memref<24x8xf32, #tpu.memory_space<vmem>>, vector<8x8xf32>
    %c2 = arith.constant 2 : index
    %c0_12 = arith.constant 0 : index
    %c0_13 = arith.constant 0 : index
    %17 = vector.load %arg9[%c2, %c0_12, %c0_13] : memref<3x8x8xf32, #tpu.memory_space<vmem>>, vector<1x8x8xf32>
    %18 = vector.shape_cast %17 : vector<1x8x8xf32> to vector<8x8xf32>
    %cst_14 = arith.constant dense<0.000000e+00> : vector<8x8xf32>
    %19 = tpu.matmul %16, %18, %cst_14 {dimension_numbers = #tpu.dot_dimension_numbers<[1], [0], [0], [1], [0, 0, 1, 1], [], []>} : vector<8x8xf32>, vector<8x8xf32>, vector<8x8xf32> -> vector<8x8xf32>
    %20 = arith.addf %15, %19 : vector<8x8xf32>
    %c0_15 = arith.constant 0 : index
    %c0_16 = arith.constant 0 : index
    %21 = vector.load %arg10[%c0_15, %c0_16] : memref<1x8xf32, #tpu.memory_space<vmem>>, vector<1x8xf32>
    %22 = vector.broadcast %21 : vector<1x8xf32> to vector<8x8xf32>
    %23 = arith.addf %20, %22 : vector<8x8xf32>
    %c0_17 = arith.constant 0 : index
    %c0_18 = arith.constant 0 : index
    %c0_19 = arith.constant 0 : index
    %24 = vector.load %arg11[%c0_17, %c0_18, %c0_19] : memref<1x8x8xf32, #tpu.memory_space<vmem>>, vector<1x8x8xf32>
    %25 = vector.shape_cast %24 : vector<1x8x8xf32> to vector<8x8xf32>
    %26 = vector.shape_cast %23 : vector<8x8xf32> to vector<1x8x8xf32>
    tpu.vector_store %arg11[%c0_17, %c0_18, %c0_19], %26 {strides = array<i32>} : memref<1x8x8xf32, #tpu.memory_space<vmem>>, vector<1x8x8xf32>,
    return
  }
  func.func @transform_0(%arg0: i32, %arg1: i32, %arg2: i32) -> (i32, i32, i32) {
    %c0_i32 = arith.constant 0 : i32
    %c0_i32_0 = arith.constant 0 : i32
    return %arg0, %arg1, %c0_i32 : i32, i32, i32
  }
  func.func @transform_1(%arg0: i32, %arg1: i32, %arg2: i32) -> (i32, i32, i32) {
    %c1_i32 = arith.constant 1 : i32
    %0 = arith.muli %arg1, %c1_i32 : i32
    %c1_i32_0 = arith.constant 1 : i32
    %1 = arith.subi %0, %c1_i32_0 : i32
    %c0_i32 = arith.constant 0 : i32
    %2 = arith.maxsi %1, %c0_i32 : i32
    %c0_i32_1 = arith.constant 0 : i32
    %c0_i32_2 = arith.constant 0 : i32
    return %arg0, %2, %c0_i32_1 : i32, i32, i32
  }
  func.func @transform_2(%arg0: i32, %arg1: i32, %arg2: i32) -> (i32, i32, i32) {
    %c1_i32 = arith.constant 1 : i32
    %0 = arith.addi %arg1, %c1_i32 : i32
    %c1_i32_0 = arith.constant 1 : i32
    %1 = arith.muli %0, %c1_i32_0 : i32
    %c0_i32 = arith.constant 0 : i32
    %2 = arith.minsi %1, %c0_i32 : i32
    %c0_i32_1 = arith.constant 0 : i32
    %c0_i32_2 = arith.constant 0 : i32
    return %arg0, %2, %c0_i32_1 : i32, i32, i32
  }
  func.func @transform_3(%arg0: i32, %arg1: i32, %arg2: i32) -> (i32, i32) {
    %c0_i32 = arith.constant 0 : i32
    %c0_i32_0 = arith.constant 0 : i32
    %c0_i32_1 = arith.constant 0 : i32
    return %c0_i32, %c0_i32_0 : i32, i32
  }
  func.func @transform_4(%arg0: i32, %arg1: i32, %arg2: i32) -> (i32, i32) {
    %c0_i32 = arith.constant 0 : i32
    %c0_i32_0 = arith.constant 0 : i32
    %c0_i32_1 = arith.constant 0 : i32
    return %c0_i32, %c0_i32_0 : i32, i32
  }
  func.func @transform_5(%arg0: i32, %arg1: i32, %arg2: i32) -> (i32, i32) {
    %c0_i32 = arith.constant 0 : i32
    %c0_i32_0 = arith.constant 0 : i32
    return %c0_i32, %arg2 : i32, i32
  }
  func.func @transform_6(%arg0: i32, %arg1: i32, %arg2: i32) -> (i32, i32, i32) {
    %c0_i32 = arith.constant 0 : i32
    %c0_i32_0 = arith.constant 0 : i32
    %c0_i32_1 = arith.constant 0 : i32
    return %c0_i32, %c0_i32_0, %arg2 : i32, i32, i32
  }
  func.func @transform_7(%arg0: i32, %arg1: i32, %arg2: i32) -> (i32, i32) {
    %c0_i32 = arith.constant 0 : i32
    %c0_i32_0 = arith.constant 0 : i32
    return %c0_i32, %arg2 : i32, i32
  }
  func.func @transform_8(%arg0: i32, %arg1: i32, %arg2: i32) -> (i32, i32, i32) {
    %c0_i32 = arith.constant 0 : i32
    return %arg0, %arg1, %arg2 : i32, i32, i32
  }
}

</mosaic_0001>

<bundles_post_ra>
// kernel: tpu_custom_call.1
= control target key start
LH: loop header
LB: loop body
LE: loop exit
PB: predicated region body
PF: predicated region fallthrough
CT: control target
= control target key end

     0   :  { %s1829_s0 = inlined_call_operand.hbm [shape: f32[2,8,8], index: 0, kind: input, shape index: {}]   ;;  %s1830_s1 = inlined_call_operand.hbm [shape: f32[2,8,8], index: 1, kind: input, shape index: {}]   ;;  %s1831_s2 = inlined_call_operand.hbm [shape: f32[2,8,8], index: 2, kind: input, shape index: {}]   ;;  %s1832_s3 = inlined_call_operand.vmem [shape: f32[1,4], index: 3, kind: input, shape index: {}]   ;;  %s1833_s4 = inlined_call_operand.vmem [shape: f32[1,4], index: 4, kind: input, shape index: {}]   ;;  %s1834_s5 = inlined_call_operand.vmem [shape: f32[4,8], index: 5, kind: input, shape index: {}]   ;;  %s1835_s6 = inlined_call_operand.hbm [shape: f32[3,8,8], index: 6, kind: input, shape index: {}]   ;;  %s1836_s7 = inlined_call_operand.vmem [shape: f32[1,8], index: 7, kind: input, shape index: {}]   ;;  %s1837_s8 = inlined_call_operand.hbm [shape: f32[2,8,8], index: 8, kind: output, shape index: {}]  }
   0x1   :  { %1848 = sst [smem:[#allocation22_spill]] %s1830_s1 }
   0x2   :  { %1849 = sst [smem:[#allocation23_spill]] %s1837_s8 }
   0x3   :  { %13 = vsyncpa [#allocation4], 0 }
   0x4   :  { %15 = vsyncpa [#allocation4 + $0x1], 0 }
   0x5   :  { %16 = vsyncpa [#allocation7], 0 }
   0x6   :  { %18 = vsyncpa [#allocation7 + $0x1], 0 }
   0x7   :  { %19 = vsyncpa [#allocation10], 0 }
   0x8   :  { %20 = vsyncpa [#allocation5], 0 }
   0x9   :  { %22 = vsyncpa [#allocation5 + $0x1], 0  ;;  %s1581_s27 = smov 0   ;;  %s1583_s28 = smov 0  }
   0xa   :  { %s1585_s29 = smov 0   ;;  %s1587_s30 = smov 0  }
   0xb   :  { %s1589_s9 = smov 0   ;;  %s1591_s10 = smov 0  }
   0xc LB: > { %1850 = sst [smem:[#allocation16_spill]] %s1503_s27  ;;  %s47_s11 = sadd.s32 1, %s1519_s9  ;;  %s1523_s10 = sphi %s1591_s10, %s28_s10   ;;  %s1519_s9 = sphi %s1589_s9, %s1876_s9   ;;  %s1515_s30 = sphi %s1587_s30, %s1875_s30   ;;  %s1511_s29 = sphi %s1585_s29, %s1879_s29   ;;  %s1507_s28 = sphi %s1583_s28, %s1878_s28   ;;  %s1503_s27 = sphi %s1581_s27, %s1877_s27  }
   0xd   : > { %1851 = sst [smem:[#allocation17_spill]] %s1519_s9  ;;  %s56_s12 = sadd.s32 1, %s1511_s29 }
   0xe   : > { %1852 = sst [smem:[#allocation18_spill]] %s1523_s10  ;;  %p49_p0 = scmp.ge.s32.totalorder %s47_s11, 2 }
   0xf   : > { %p63_p1 = scmp.ne.s32.totalorder %s1511_s29, %s1507_s28  ;;  %p64_p2 = scmp.eq.s32.totalorder %s1523_s10, 0 }
  0x10   : > { %s1881_s11 = smov (%p49_p0, %s47_s11), 0  ;;  %p1263_p5 = scmp.lt.s32.totalorder %s1523_s10, 2 }
  0x11   : > { %1853 = sst [smem:[#allocation19_spill]] %s1881_s11  ;;  %p65_p4 = por %p64_p2, %p63_p1 }
  0x12   : > { %s51_s13 = ssub.s32 %s1519_s9, %s1881_s11  ;;  %s1838_s14 = sand.u32 1, %s1511_s29  }
  0x13   : > { %p54_p6 = scmp.eq.s32.totalorder %s51_s13, 0  ;;  %s1628_s15 = sshll.u32 %s1838_s14, 3 }
  0x14   : > { %s1631_s16 = sshll.u32 %s1519_s9, 7  ;;  %p1633_p7 = pnand %p1263_p5, %p65_p4 }
  0x15   : > { %s1638_s18 = scalar_select %p54_p6, %s1511_s29, %s56_s12  }
  0x16   : > { %s364_s19 = sand.u32 1, %s1523_s10   ;;  %s1856_s1 = sld [smem:[#allocation22_spill]] }
  0x17   : > { %1855 = sst [smem:[#allocation20_spill]] %s1638_s18  ;;  %s368_s23 = scalar_lea.vmem [#allocation6], %s1628_s15 }
  0x18   : > { %s379_s24 = sshll.u32 %s368_s23, 4  ;;  %s1646_s25 = scalar_lea.sflag [#allocation7], %s364_s19  ;;  %s380_s24 = int_to_ptr.vmem [resolvable:$true] %s379_s24 }
  0x19   : > { %p1842_p8 = pneg %p1633_p7  ;;  %s1338_s26 = scalar_lea.vmem %s380_s24, 128 }
  0x1a   : > { %p1339_p9 = scmp.ne.s32.totalorder %s380_s24, %s1338_s26  ;;  %s1525_s12 = smov [#allocation6]  }
  0x1b   : > { %s1343_s13 = sshll.u32 %s1525_s12, 4  ;;  %s1344_s13 = int_to_ptr.vmem [resolvable:$false] %s1343_s13 }
  0x1c   : > { %s377_s22 = scalar_lea.hbm %s1856_s1, %s1631_s16  ;;  %p1341_p10 = pnand %p1339_p9, %p1842_p8 }
  0x1d   : > { %s1345_s14 = scalar_lea.vmem %s1344_s13, 256  ;;  %p1346_p12 = scmp.lt.s32.totalorder %s380_s24, %s1344_s13 }
  0x1e   : > { %p1342_p11 = pneg %p1341_p10  ;;  %p1347_p13 = scmp.lt.s32.totalorder %s1345_s14, %s1338_s26 }
  0x20   : > { %p1348_p0 = por %p1347_p13, %p1346_p12 }
  0x22   : > { %p1349_p2 = pnand %p1348_p0, %p1342_p11 }
  0x24   : > { %1352 = shalt.err (!%p1349_p2)
}
  0x25   : > { %1254 = dma.hbm_to_vmem [thread:$0]  (!%p1633_p7), %s377_s22, 128, %s380_s24, %s1646_s25  }
  0x26   : > { %s1657_s19 = sadd.s32 4294967295, %s1523_s10   ;;  %s1174_s14 = sadd.s32 4294967294, %s1523_s10  }
  0x27   : > { %p69_p4 = scmp.ne.s32.totalorder %s1507_s28, %s1503_s27  ;;  %p1841_p5 = scmp.eq.s32.totalorder %s1657_s19, 0 }
  0x28   : > { %p285_p6 = scmp.eq.s32.totalorder %s1657_s19, 1  ;;  %p291_p9 = scmp.eq.s32.totalorder %s1174_s14, 1 }
  0x29   : > { %p1175_p10 = scmp.ge.s32.totalorder %s1523_s10, 1  ;;  %p1667_p11 = por %p1841_p5, %p69_p4 }
  0x2a   : > { %p1674_p12 = por %p285_p6, %p63_p1  ;;  %p1678_p13 = por %p291_p9, %p69_p4 }
  0x2b   : > { %p298_p0 = scmp.lt.s32.totalorder %s1523_s10, 3  ;;  %s1526_s24 = smov [#allocation9]  }
  0x2c   : > { %s1859_s22 = scalar_select %p1678_p13, 1, 0 }
  0x2d   : > { %p1683_p2 = pnand %p1175_p10, %p298_p0  ;;  %s325_s26 = sshll.u32 %s1526_s24, 4  ;;  %s326_s26 = int_to_ptr.vmem [resolvable:$true] %s325_s26 }
  0x2e   : > { %1860 = sst [smem:[#allocation21_spill]] %s1859_s22  ;;  %s349_s11 = scalar_lea.vmem [#allocation3], %s1628_s15 }
  0x2f   : > { %p1244_p3 = pneg %p1683_p2  ;;  %s357_s9 = sshll.u32 %s349_s11, 4  ;;  %s1700_s9 = int_to_ptr.vmem [resolvable:$true] %s357_s9 }
  0x30   : > { %s1364_s24 = scalar_lea.vmem %s326_s26, 384  ;;  %p1372_p0 = scmp.lt.s32.totalorder %s326_s26, %s326_s26 }
  0x31   : > { %p1691_p1 = pnand %p1244_p3, %p1841_p5  ;;  %p1365_p6 = scmp.ne.s32.totalorder %s326_s26, %s1364_s24 }
  0x32   : > { %p1373_p3 = scmp.lt.s32.totalorder %s1364_s24, %s1364_s24 }
  0x33   : > { %p1355_p4 = pneg %p1691_p1 }
  0x34   : > { %p1374_p5 = por %p1373_p3, %p1372_p0 }
  0x35   : > { %p1367_p9 = pnand %p1365_p6, %p1355_p4 }
  0x37   : > { %p1368_p10 = pneg %p1367_p9 }
  0x39   : > { %p1375_p8 = pnand %p1374_p5, %p1368_p10 }
  0x3b   : > { %1378 = shalt.err (!%p1375_p8)
}
  0x3c   : > { %s1527_s18 = smov 128   ;;  %s1528_s11 = smov 8  }
  0x3d   : > { %1247 = dma.hbm_to_vmem [thread:$0]  (!%p1691_p1), %s1835_s6, 384, %s326_s26, [#allocation10], %s1527_s18, %s1527_s18, %s1528_s11  }
  0x3e   : > { %s1863_s1 = sand.u32 1, %s1511_s29   ;;  %s1392_s22 = scalar_lea.vmem %s1700_s9, 128 }
  0x3f   : > { %s346_s10 = scalar_lea.sflag [#allocation4], %s1863_s1  ;;  %p1393_p4 = scmp.ne.s32.totalorder %s1700_s9, %s1392_s22 }
  0x40   : > { %p1864_p5 = pneg %p1633_p7  ;;  %s1529_s24 = smov [#allocation3]  }
  0x41   : > { %s1397_s27 = sshll.u32 %s1529_s24, 4  ;;  %s1398_s27 = int_to_ptr.vmem [resolvable:$false] %s1397_s27 }
  0x42   : > { %p1395_p8 = pnand %p1393_p4, %p1864_p5  ;;  %s1399_s8 = scalar_lea.vmem %s1398_s27, 256 }
  0x43   : > { %p1400_p9 = scmp.lt.s32.totalorder %s1700_s9, %s1398_s27  ;;  %p1401_p10 = scmp.lt.s32.totalorder %s1399_s8, %s1392_s22 }
  0x44   : > { %p1396_p6 = pneg %p1395_p8 }
  0x45   : > { %p1402_p0 = por %p1401_p10, %p1400_p9 }
  0x47   : > { %p1403_p3 = pnand %p1402_p0, %p1396_p6 }
  0x49   : > { %1406 = shalt.err (!%p1403_p3)
}
  0x4a   : > { %s1865_s26 = scalar_lea.hbm %s1829_s0, %s1631_s16  ;;  %s399_s27 = scalar_lea.hbm %s1831_s2, %s1631_s16 }
  0x4b   : > { %1251 = dma.hbm_to_vmem [thread:$0]  (!%p1633_p7), %s1865_s26, 128, %s1700_s9, %s346_s10  }
  0x4c   : > { %s390_s8 = scalar_lea.vmem [#allocation8], %s1628_s15  ;;  %p1866_p4 = pmov %p1864_p5 }
  0x4d   : > { %s401_s22 = sshll.u32 %s390_s8, 4  ;;  %s1530_s14 = smov [#allocation8]   ;;  %s402_s22 = int_to_ptr.vmem [resolvable:$true] %s401_s22 }
  0x4e   : > { %s1420_s13 = scalar_lea.vmem %s402_s22, 128  ;;  %s1425_s24 = sshll.u32 %s1530_s14, 4  ;;  %s1426_s24 = int_to_ptr.vmem [resolvable:$false] %s1425_s24 }
  0x4f   : > { %p1421_p1 = scmp.ne.s32.totalorder %s402_s22, %s1420_s13  ;;  %s1427_s18 = scalar_lea.vmem %s1426_s24, 256 }
  0x50   : > { %p1428_p6 = scmp.lt.s32.totalorder %s402_s22, %s1426_s24  ;;  %p1429_p9 = scmp.lt.s32.totalorder %s1427_s18, %s1420_s13 }
  0x51   : > { %p1423_p5 = pnand %p1421_p1, %p1866_p4 }
  0x52   : > { %p1430_p10 = por %p1429_p9, %p1428_p6 }
  0x53   : > { %p1424_p8 = pneg %p1423_p5 }
  0x55   : > { %p1431_p0 = pnand %p1430_p10, %p1424_p8 }
  0x57   : > { %1434 = shalt.err (!%p1431_p0)
}
  0x58   : > { %1257 = dma.hbm_to_vmem [thread:$0]  (!%p1633_p7), %s399_s27, 128, %s402_s22, %s1646_s25  }
  0x59   : > { %410 = sbr.rel (%p1683_p2) target bundleno = 978 (0x3d2), region = 52  ;;  %s1739_s9 = sand.u32 (!%p1683_p2), 1, %s1507_s28  }
  0x5a   : > { %s1187_s10 = sshll.u32 (!%p1683_p2), %s1739_s9, 3  ;;  %s413_s15 = scalar_lea.sflag (!%p1683_p2), [#allocation4], %s1739_s9 }
  0x5b   : > { %s416_s16 = scalar_lea.vmem (!%p1683_p2), [#allocation3], %s1187_s10 }
  0x5e   : > { %1486 = dma.done.wait (%p1667_p11), %s413_s15, 128  }
  0x5f   : > { %1488 = vsyncadd (%p1667_p11), %s413_s15, 4294967168  ;;  %s421_s17 = sand.u32 1, %s1657_s19  }
  0x60   : > { %s422_s25 = scalar_lea.sflag [#allocation7], %s421_s17 }
  0x61   : > { %1490 = dma.done.wait (%p1667_p11), %s422_s25, 256  }
  0x62   : > { %1492 = vsyncadd (%p1667_p11), %s422_s25, 4294967040  ;;  %p1867_p7 = scmp.eq.s32.totalorder %s1657_s19, 0 }
  0x64   : > { %1494 = dma.done.wait (%p1867_p7), [#allocation10], 384   ;;  %p1868_p2 = pmov %p1867_p7 }
  0x65   : > { %v507_v0 = vld [vmem:[%s416_s16] sm:$0xff]  ;;  %vm508_vm0 = vcmask 31744   ;;  %s1531_s23 = smov 124   ;;  %s1532_s1 = smov 4   ;;  %vm570_vm1 = vcmask 25600   ;;  %vm621_vm2 = vcmask 24576  }
  0x66   : > { %1496 = vsyncadd (%p1868_p2), [#allocation10], 4294966912  ;;  %538 = vrot.lane.b32.xlu0 %v507_v0, %s1531_s23  ;;  %v509_v1 = vsel %vm508_vm0, %v507_v0, 0.0  ;;  %v1203_v13 = vld [vmem:[%s1833_s4] ss:$0 sm:$0xff]  ;;  %v1533_v17 = vmov 0.0  }
  0x67   : > { %510 = vadd.xlane.f32.xlu1 %v509_v1  ;;  %v1202_v16 = vld [vmem:[%s1832_s3] ss:$0 sm:$0xff]  ;;  %1212 = vmatprep.subr.mxu0 %v1533_v17  ;;  %590 = vst.msk [vmem:[#allocation2 + $0x6] sm:$0x3] %vm570_vm1, %v1533_v17  ;;  %vm615_vm3 = vcmask 58400   ;;  %vm666_vm4 = vcmask 57376  }
  0x68   : > { %1217 = vmatprep.subr.mxu1 %v1533_v17  ;;  %641 = vst.msk [vmem:[#allocation2 + $0x10] sm:$0x1] %vm621_vm2, %v1533_v17  ;;  %v671_v18 = vld [vmem:[#allocation9] sm:$0xff]  ;;  %vm1534_vm5 = vmmov 0   ;;  %v669_v19 = vld [vmem:[%s1834_s5] sm:$0xf] }
  0x69   : > { %616 = vst.msk [vmem:[#allocation2 + $0x6] sm:$0x3] %vm615_vm3, %v1533_v17  ;;  %1213 = vmatpush3.msra.mxu0 %v671_v18  ;;  %1214 = vmatprep.mubr.msk.f32.mxu0 %vm1534_vm5, %v1533_v17  ;;  %vm752_vm6 = vcmask 1043456   ;;  %vm566_vm7 = vcmask 64544   ;;  %vm672_vm8 = vcmask 64512   ;;  %v828_v36 = vld [vmem:[#allocation9 + $0x8] sm:$0xff] }
  0x6a   : > { %667 = vst.msk [vmem:[#allocation2 + $0x10] sm:$0x1] %vm666_vm4, %v1533_v17  ;;  %1222 = vmatprep.subr.mxu0 %v1533_v17  ;;  %1219 = vmatprep.mubr.msk.f32.mxu1 %vm1534_vm5, %v1533_v17  ;;  %v905_v40 = vld [vmem:[#allocation9 + $0x10] sm:$0xff]  ;;  %v1197_v52 = vld [vmem:[%s1836_s7] ss:$0 sm:$0xff]  ;;  %s1199_s13 = sshll.u32 %s1515_s30, 7 }
  0x6b   : > { %1218 = vmatpush3.msk.msra.mxu1 %vm752_vm6, %v669_v19  ;;  %s487_s14 = scalar_lea.vmem [#allocation11], %s1187_s10  ;;  %s1869_s16 = sld [smem:[#allocation23_spill]] }
  0x6c   : > { %1227 = vmatprep.subr.mxu1 %v1533_v17  ;;  %s1005_s24 = sshll.u32 %s487_s14, 4  ;;  %s990_s25 = scalar_lea.sflag [#allocation5], %s1739_s9  ;;  %s1006_s24 = int_to_ptr.vmem [resolvable:$true] %s1005_s24 }
  0x6d   : > { %s1535_s30 = smov [#allocation11]  }
  0x6e   : > { %s1439_s19 = sshll.u32 %s1535_s30, 4  ;;  %s1440_s19 = int_to_ptr.vmem [resolvable:$false] %s1439_s19 }
  0x6f   : > { %s1441_s10 = scalar_lea.vmem %s1440_s19, 256  ;;  %p1442_p4 = scmp.lt.s32.totalorder %s1006_s24, %s1440_s19 }
  0x71   : > { %s1003_s17 = scalar_lea.hbm %s1869_s16, %s1199_s13 }
  0xd8   : > { %v539_v2 = vpop.permute.xlu0 %538 }
  0xd9   : > { %v541_v3 = vsel %vm508_vm0, %v539_v2, 0.0 }
  0xda   : > { %542 = vadd.xlane.f32.xlu0 %v541_v3 }
  0xf0   : > { %v511_v8 = vpop.xlane.xlu1 %510 }
  0xf1   : > { %v512_v9 = vmul.f32 0.25, %v511_v8 }
  0xf3   : > { %v513_v10 = vsub.f32 %v507_v0, %v512_v9 }
  0xf5   : > { %v514_v11 = vmul.f32 %v513_v10, %v513_v10 }
  0xf7   : > { %v515_v12 = vsel %vm508_vm0, %v514_v11, 0.0 }
 0x163   : > { %v543_v4 = vpop.xlane.xlu0 %542 }
 0x164   : > { %v544_v5 = vmul.f32 0.25, %v543_v4 }
 0x166   : > { %v545_v6 = vsub.f32 %v507_v0, %v544_v5 }
 0x168   : > { %v546_v7 = vmul.f32 %v545_v6, %v545_v6 }
 0x16a   : > { %548 = vrot.lane.b32.xlu1 %v546_v7, %s1531_s23 }
 0x18e   : > { %516 = vadd.xlane.f32.xlu1 %v515_v12 }
 0x19f   : > { %562 = vrot.lane.b32.xlu1 %v1203_v13, %s1532_s1 }
 0x1dc   : > { %v549_v14 = vpop.permute.xlu1 %548 }
 0x1dd   : > { %v551_v15 = vsel %vm508_vm0, %v549_v14, 0.0 }
 0x1de   : > { %552 = vadd.xlane.f32.xlu0 %v551_v15 }
 0x1f4   : > { %558 = vrot.lane.b32.xlu0 %v1202_v16, %s1532_s1 }
 0x217   : > { %v517_v20 = vpop.xlane.xlu1 %516 }
 0x218   : > { %v518_v21 = vmul.f32 0.25, %v517_v20 }
 0x21a   : > { %v519_v22 = vadd.f32 1e-05, %v518_v21 }
 0x21b   : > { %v563_v33 = vpop.permute.xlu1 %562 }
 0x21c   : > { %1321 = vrsqrt.f32 %v519_v22 }
 0x229   : > { %v1322_v23 = vpop.eup %1321 }
 0x22a   : > { %v521_v24 = vmul.f32 %v1322_v23, %v513_v10 }
 0x22c   : > { %v528_v25 = vmul.f32 %v1202_v16, %v521_v24 }
 0x22e   : > { %v535_v26 = vadd.f32 %v1203_v13, %v528_v25 }
 0x230   : > { %536 = vst.msk [vmem:[#allocation2 + $0x8] sm:$0xff] %vm508_vm0, %v535_v26 }
 0x267   : > { %v553_v27 = vpop.xlane.xlu0 %552 }
 0x268   : > { %v554_v28 = vmul.f32 0.25, %v553_v27 }
 0x26a   : > { %v555_v29 = vadd.f32 1e-05, %v554_v28 }
 0x26b   : > { %v559_v31 = vpop.permute.xlu0 %558 }
 0x26c   : > { %1323 = vrsqrt.f32 %v555_v29 }
 0x279   : > { %v1324_v30 = vpop.eup %1323 }
 0x27a   : > { %v557_v32 = vmul.f32 %v1324_v30, %v545_v6 }
 0x27c   : > { %v561_v34 = vmul.f32 %v559_v31, %v557_v32 }
 0x27e   : > { %v565_v35 = vadd.f32 %v563_v33, %v561_v34 }
 0x280   : > { %567 = vst.msk [vmem:[#allocation2 + $0x8] sm:$0xff] %vm566_vm7, %v565_v35 }
 0x287   : > { %v670_v37 = vld [vmem:[#allocation2 + $0x7] sm:$0xff] }
 0x288   : > { %v668_v38 = vld [vmem:[#allocation2 + $0x6] sm:$0xff]  ;;  %1215 = vmatmul.mubr.msk.f32.vlgmr.msra.gmra.mxu0 %vm672_vm8, %v670_v37 }
 0x289   : > { %747 = vrot.lane.b32.xlu0 %v668_v38, %s1531_s23  ;;  %1223 = vmatpush3.msra.mxu0 %v828_v36  ;;  %v826_v39 = vld [vmem:[#allocation2 + $0x8] sm:$0xff]  ;;  %s1435_s23 = scalar_lea.vmem %s1006_s24, 128 }
 0x28a   : > { %1224 = vmatprep.mubr.msk.f32.mxu0 %vm1534_vm5, %v1533_v17  ;;  %v903_v42 = vld [vmem:[#allocation2 + $0x9] sm:$0xff]  ;;  %p1436_p11 = scmp.ne.s32.totalorder %s1006_s24, %s1435_s23  ;;  %p1443_p5 = scmp.lt.s32.totalorder %s1441_s10, %s1435_s23 }
 0x28c   : > { %1225 = vmatmul.mubr.msk.f32.vlgmr.msra.gmra.mxu0 %vm672_vm8, %v826_v39  ;;  %p1437_p3 = pnand %p1436_p11, %p1674_p12  ;;  %p1444_p8 = por %p1443_p5, %p1442_p4 }
 0x28e   : > { %p1438_p1 = pneg %p1437_p3 }
 0x290   : > { %p1445_p6 = pnand %p1444_p8, %p1438_p1 }
 0x2fb   : > { %v748_v41 = vpop.permute.xlu0 %747 }
 0x2fc   : > { %1220 = vmatmul.mubr.msk.f32.vlgmr.msra.gmra.mxu1 %vm508_vm0, %v748_v41 }
 0x2fd   : > { %1228 = vmatpush3.msra.mxu1 %v905_v40  ;;  %1229 = vmatprep.mubr.msk.f32.mxu1 %vm1534_vm5, %v1533_v17 }
 0x300   : > { %1230 = vmatmul.mubr.msk.f32.vlgmr.msra.gmra.mxu1 %vm672_vm8, %v903_v42 }
 0x348   : > { %v742_v43 = vpop.f32.mrf.mxu0 }
 0x34a   : > { %v1216_v44 = vpop.f32.mrf.mxu0 }
 0x34c   : > { %v898_v45 = vpop.f32.mrf.mxu0 }
 0x34e   : > { %v1226_v46 = vpop.f32.mrf.mxu0 }
 0x3bc   : > { %v822_v47 = vpop.f32.mrf.mxu1 }
 0x3bd   : > { %v823_v48 = vadd.f32 %v822_v47, %v742_v43 }
 0x3be   : > { %v1221_v49 = vpop.f32.mrf.mxu1 }
 0x3bf   : > { %v902_v50 = vadd.f32 %v898_v45, %v823_v48 }
 0x3c0   : > { %v975_v51 = vpop.f32.mrf.mxu1 }
 0x3c1   : > { %v979_v53 = vadd.f32 %v975_v51, %v902_v50 }
 0x3c2   : > { %v1231_v54 = vpop.f32.mrf.mxu1 }
 0x3c3   : > { %v987_v55 = vadd.f32 %v1197_v52, %v979_v53 }
 0x3c5   : > { %988 = vst.msk [vmem:[%s487_s14] sm:$0xff] %vm672_vm8, %v987_v55 }
 0x3c6   : > { %1448 = shalt.err (!%p1445_p6)
}
 0x3c7   : > { %s1449_s20 = scalar_lea.hbm %s1003_s17, 128  ;;  %s1453_s26 = scalar_lea.hbm %s1869_s16, 256 }
 0x3c8   : > { %p1450_p9 = scmp.ne.s32.totalorder %s1003_s17, %s1449_s20  ;;  %p1454_p7 = scmp.lt.s32.totalorder %s1003_s17, %s1869_s16 }
 0x3c9   : > { %p1455_p2 = scmp.lt.s32.totalorder %s1453_s26, %s1449_s20 }
 0x3ca   : > { %p1451_p10 = pnand %p1450_p9, %p1674_p12 }
 0x3cb   : > { %p1456_p11 = por %p1455_p2, %p1454_p7 }
 0x3cc   : > { %p1452_p0 = pneg %p1451_p10 }
 0x3ce   : > { %p1457_p3 = pnand %p1456_p11, %p1452_p0 }
 0x3d0   : > { %1460 = shalt.err (!%p1457_p3)
}
 0x3d1   : > { %1242 = dma.vmem_to_hbm [thread:$0]  (%p1674_p12), %s1006_s24, 128, %s1003_s17, %s990_s25  }
 0x3d2 PF: > { %s1870_s27 = sld [smem:[#allocation16_spill]] }
 0x3d3   : > { %s1872_s22 = sld [smem:[#allocation18_spill]] }
 0x3d8   : > { %s1017_s13 = sand.u32 1, %s1870_s27  }
 0x3d9   : > { %p1873_p1 = scmp.ge.s32.totalorder %s1872_s22, 2  ;;  %s1018_s14 = scalar_lea.sflag [#allocation5], %s1017_s13 }
 0x3db   : > { %p1259_p4 = pnand %p1873_p1, %p1678_p13 }
 0x3dd   : > { %p1260_p5 = pneg %p1259_p4 }
 0x3df   : > { %1498 = dma.done.wait (%p1260_p5), %s1018_s14, 128  }
 0x3e0   : > { %1500 = vsyncadd (%p1260_p5), %s1018_s14, 4294967168  ;;  %s28_s10 = sadd.s32 1, %s1872_s22   ;;  %s1874_s18 = sld [smem:[#allocation20_spill]] }
 0x3e1   : > { %p25_p8 = scmp.ge.s32.totalorder %s28_s10, 4   ;;  %s1875_s30 = sld [smem:[#allocation17_spill]] }
 0x3e2   : > { %s1876_s9 = sld [smem:[#allocation19_spill]]  ;;  %s1877_s27 = smov %s1507_s28 }
 0x3e3   : > { %s1878_s28 = smov %s1511_s29  ;;  %27 = sbr.rel (!%p25_p8) target bundleno = 12 (0xc), region = 138 }
 0x3e6   : > { %s1879_s29 = smov %s1874_s18 }
 0x3e8   :  { %1023 = vsyncpa [#allocation4], 1 }
 0x3e9   :  { %1025 = vsyncpa [#allocation4 + $0x1], 1 }
 0x3ea   :  { %1026 = vsyncpa [#allocation7], 1 }
 0x3eb   :  { %1028 = vsyncpa [#allocation7 + $0x1], 1 }
 0x3ec   :  { %1029 = vsyncpa [#allocation10], 1 }
 0x3ed   :  { %1030 = vsyncpa [#allocation5], 1 }
 0x3ee   :  { %1032 = vsyncpa [#allocation5 + $0x1], 1 }

</bundles_post_ra>
